<compile_context>
chip_gen: v6e
topology: v6e:2x2x1
jax: 0.10.0
libtpu: 0.0.40
codegen_flags: <defaults>
</compile_context>

<pallas_src>
import jax
import jax.numpy as jnp
from jax.experimental import pallas as pl
from jax.experimental.pallas import tpu as pltpu


def _round_up(x, m):
    return ((x + m - 1) // m) * m


def _make_sdn_kernel(use_mid, use_attw):
    """Build the SDN-loss kernel specialized for the enabled loss terms.

    Ref order:
      inputs : lengths(TB,1) i32, pred_start, pred_end, start, end,
               [localiz], [pred_mid], [pred_attw]   (all (TB,TT))
      output : out(TB,8) f32 packed per-row sums
               lane 0: start KL, 1: end KL, 2: mid num, 3: shared den,
               lane 4: attw num, 5-7: unused.
      scratch: sacc, eacc, [dacc], [macc], [aacc]   (all (TB,1) f32)
    """

    def kernel(*refs):
        it = iter(refs)
        len_ref = next(it)
        ps_ref = next(it)
        pe_ref = next(it)
        st_ref = next(it)
        en_ref = next(it)
        loc_ref = next(it) if (use_mid or use_attw) else None
        pm_ref = next(it) if use_mid else None
        pa_ref = next(it) if use_attw else None
        out_ref = next(it)
        sacc = next(it)
        eacc = next(it)
        dacc = next(it) if (use_mid or use_attw) else None
        macc = next(it) if use_mid else None
        aacc = next(it) if use_attw else None

        TB, TT = ps_ref.shape
        j = pl.program_id(1)
        nj = pl.num_programs(1)

        # Zero the resident scratch accumulators on the first T-tile.
        @pl.when(j == 0)
        def _():
            sacc[...] = jnp.zeros_like(sacc)
            eacc[...] = jnp.zeros_like(eacc)
            if dacc is not None:
                dacc[...] = jnp.zeros_like(dacc)
            if macc is not None:
                macc[...] = jnp.zeros_like(macc)
            if aacc is not None:
                aacc[...] = jnp.zeros_like(aacc)

        # valid[t] == (j*TT + t) < length, computed via a per-row scalar
        # subtraction (no full-tile offset add).  Because lengths <= T, this
        # also masks the implicit tile-pad region of every stream.
        rem = len_ref[...] - j * TT                                  # (TB, 1) i32
        t_iota = jax.lax.broadcasted_iota(jnp.int32, (TB, TT), 1)
        valid = t_iota < rem                                         # (TB, TT) bool

        ps = ps_ref[...].astype(jnp.float32)
        pe = pe_ref[...].astype(jnp.float32)
        st = st_ref[...].astype(jnp.float32)
        en = en_ref[...].astype(jnp.float32)

        # kl_div: -sum_{t<L} gt*log(p/gt); the guard enforces 0*log(0) = 0 and
        # drops padded / out-of-length columns without 0*inf NaNs.
        kl_s = jnp.where(valid & (st > 0), st * jnp.log(ps / st), 0.0)
        kl_e = jnp.where(valid & (en > 0), en * jnp.log(pe / en), 0.0)
        sacc[...] += -jnp.sum(kl_s, axis=-1, keepdims=True)
        eacc[...] += -jnp.sum(kl_e, axis=-1, keepdims=True)

        if use_mid or use_attw:
            loc = loc_ref[...].astype(jnp.float32)
            # Shared denominator (mid & attw use the same masked sum of localiz).
            dacc[...] += jnp.sum(jnp.where(valid, loc, 0.0), axis=-1,
                                 keepdims=True)

        if use_mid:
            pm = pm_ref[...].astype(jnp.float32)
            mid_term = jnp.where(valid, -loc * jnp.log(pm), 0.0)
            macc[...] += jnp.sum(mid_term, axis=-1, keepdims=True)

        if use_attw:
            pa = pa_ref[...].astype(jnp.float32)
            a_term = jnp.where(valid, -loc * jnp.log(pa + 1e-8), 0.0)
            aacc[...] += jnp.sum(a_term, axis=-1, keepdims=True)

        # Pack the per-row partials into the (TB, 8) output once, on the last
        # T-tile (the output block is resident across the T axis).
        @pl.when(j == nj - 1)
        def _():
            lane = jax.lax.broadcasted_iota(jnp.int32, (TB, 8), 1)
            res = (jnp.where(lane == 0, sacc[...], 0.0)
                   + jnp.where(lane == 1, eacc[...], 0.0))
            if use_mid:
                res = res + jnp.where(lane == 2, macc[...], 0.0)
            if use_mid or use_attw:
                res = res + jnp.where(lane == 3, dacc[...], 0.0)
            if use_attw:
                res = res + jnp.where(lane == 4, aacc[...], 0.0)
            out_ref[...] = res

    return kernel


def sdn_loss(output, target, *, use_attention_loss=True, use_mid_loss=True):
    """JAX/Pallas equivalent of _SDN_Loss.forward.

    Returns (loss_dict, individual_loss) — the dict matches the PyTorch module;
    individual_loss is returned additionally (the module computes it internally).
    """
    pred_start = output['pred_start']
    pred_end = output['pred_end']
    start = target['start']
    end = target['end']
    videoFeat_lengths = target['videoFeat_lengths']
    localiz = target['localiz']
    if 'video_mask' in output:
        videoFeat_lengths = output['video_mask'].sum(-1)
        localiz = output['video_mask']

    B, T = pred_start.shape

    # Batch tile: >= 2 tiles whenever B > 8 so both v7x TensorCores get work;
    # time tile: up to 2048 columns (double-buffered footprint for 7 f32
    # streams at TB=128 stays < 16 MiB, under the 32 MiB scoped VMEM limit on
    # v5e/v6e and on v7x's smaller 64 MiB part).
    TB = min(_round_up(pl.cdiv(B, 2), 8), 128)
    TT = min(_round_up(T, 128), 2048)
    grid = (pl.cdiv(B, TB), pl.cdiv(T, TT))

    lengths = jnp.asarray(videoFeat_lengths).astype(jnp.int32).reshape(B, 1)

    # Inputs are passed unpadded in their native dtype; the kernel up-casts
    # in-register and masks the ragged tail blocks itself.
    inputs = [lengths, pred_start, pred_end, start, end]
    big_spec = pl.BlockSpec((TB, TT), lambda i, j: (i, j))
    in_specs = [pl.BlockSpec((TB, 1), lambda i, j: (i, 0))] + [big_spec] * 4
    scratch_shapes = [pltpu.VMEM((TB, 1), jnp.float32),   # start KL acc
                      pltpu.VMEM((TB, 1), jnp.float32)]   # end KL acc

    if use_mid_loss or use_attention_loss:
        inputs.append(localiz)
        in_specs.append(big_spec)
        scratch_shapes.append(pltpu.VMEM((TB, 1), jnp.float32))   # shared den
    if use_mid_loss:
        inputs.append(output['pred_mid'])
        in_specs.append(big_spec)
        scratch_shapes.append(pltpu.VMEM((TB, 1), jnp.float32))   # mid num
    if use_attention_loss:
        inputs.append(output['pred_attw'])
        in_specs.append(big_spec)
        scratch_shapes.append(pltpu.VMEM((TB, 1), jnp.float32))   # attw num

    bytes_accessed = int(sum(int(x.size) * x.dtype.itemsize for x in inputs)
                         + B * 8 * 4)
    transcendentals = int((2 + int(use_mid_loss) + int(use_attention_loss)) * B * T)
    flops = int(16 * B * T)

    acc = pl.pallas_call(
        _make_sdn_kernel(use_mid_loss, use_attention_loss),
        out_shape=jax.ShapeDtypeStruct((B, 8), jnp.float32),
        grid=grid,
        in_specs=in_specs,
        out_specs=pl.BlockSpec((TB, 8), lambda i, j: (i, 0)),
        scratch_shapes=scratch_shapes,
        compiler_params=pltpu.CompilerParams(
            dimension_semantics=("parallel", "arbitrary"),
            vmem_limit_bytes=32 * 1024 * 1024),
        cost_estimate=pl.CostEstimate(flops=flops,
                                      transcendentals=transcendentals,
                                      bytes_accessed=bytes_accessed),
    )(*inputs)

    isl = acc[:, 0]
    iel = acc[:, 1]

    start_loss = jnp.mean(isl)
    end_loss = jnp.mean(iel)
    individual_loss = isl + iel

    loss = {}
    total_loss = start_loss + end_loss
    if use_attention_loss:
        ial = acc[:, 4] / (acc[:, 3] + 1e-8)
        attw_loss = 0.5 * jnp.mean(ial)
        total_loss = total_loss + attw_loss
        loss['attw_loss'] = attw_loss
    if use_mid_loss:
        iml = 0.7 * acc[:, 2] / (acc[:, 3] + 1e-8)
        mid_loss = jnp.mean(iml)
        total_loss = total_loss + mid_loss
        loss['mid_loss'] = mid_loss
        individual_loss = individual_loss + iml

    loss['total_loss'] = total_loss
    loss['start_loss'] = start_loss
    loss['end_loss'] = end_loss
    return loss, individual_loss


# ----------------------------------------------------------------------------
# Pure-JAX reference mirroring the PyTorch module (for verification only).
# ----------------------------------------------------------------------------
def _reference(output, target, *, use_attention_loss=True, use_mid_loss=True):
    ps = output['pred_start'].astype(jnp.float32)
    pe = output['pred_end'].astype(jnp.float32)
    st = target['start'].astype(jnp.float32)
    en = target['end'].astype(jnp.float32)
    loc = target['localiz'].astype(jnp.float32)
    lengths = target['videoFeat_lengths']
    if 'video_mask' in output:
        lengths = output['video_mask'].sum(-1)
        loc = output['video_mask'].astype(jnp.float32)

    B, T = ps.shape
    lengths = jnp.asarray(lengths).reshape(B, 1)
    mask = (jnp.arange(T)[None, :] < lengths)

    def kl(p, gt):
        term = jnp.where(mask & (gt > 0), gt * jnp.log(p / gt), 0.0)
        return -jnp.sum(term, axis=-1)

    isl = kl(ps, st)
    iel = kl(pe, en)
    start_loss = jnp.mean(isl)
    end_loss = jnp.mean(iel)
    individual = isl + iel

    loss = {}
    total = start_loss + end_loss
    if use_attention_loss:
        pa = output['pred_attw'].astype(jnp.float32)
        ial = jnp.sum(-loc * jnp.log(pa + 1e-8), -1) / (jnp.sum(loc, -1) + 1e-8)
        attw_loss = 0.5 * jnp.mean(ial)
        total = total + attw_loss
        loss['attw_loss'] = attw_loss
    if use_mid_loss:
        pm = output['pred_mid'].astype(jnp.float32)
        fmask = mask.astype(jnp.float32)
        iml = 0.7 * jnp.sum(fmask * (-loc) * jnp.log(pm), -1) \
              / (jnp.sum(fmask * loc, -1) + 1e-8)
        mid_loss = jnp.mean(iml)
        total = total + mid_loss
        loss['mid_loss'] = mid_loss
        individual = individual + iml
    loss['total_loss'] = total
    loss['start_loss'] = start_loss
    loss['end_loss'] = end_loss
    return loss, individual


def _make_case(key, B, T, lengths, seg_lo, seg_hi):
    ks = jax.random.split(key, 6)
    sm = lambda k: jax.nn.softmax(jax.random.normal(k, (B, T)), axis=-1)
    output = {'pred_start': sm(ks[0]), 'pred_end': sm(ks[1]),
              'pred_mid': sm(ks[2]), 'pred_attw': sm(ks[3])}
    start = sm(ks[4])
    end = sm(ks[5])
    t_idx = jnp.arange(T)[None, :]
    localiz = ((t_idx >= jnp.asarray(seg_lo)[:, None]) &
               (t_idx < jnp.asarray(seg_hi)[:, None])).astype(jnp.float32)
    target = {'start': start, 'end': end,
              'videoFeat_lengths': jnp.asarray(lengths, dtype=jnp.int32),
              'localiz': localiz}
    return output, target


# TODO(synk): the PyTorch module's pdb.set_trace() NaN hooks and the unused
# nn.MSELoss member have no Pallas equivalent and are intentionally omitted.

if __name__ == "__main__":
    key = jax.random.PRNGKey(0)
    k1, k2, k3, k4, k5, k6 = jax.random.split(key, 6)

    cases = [
        # (output, target, use_attention_loss, use_mid_loss)
        # Tiny case, ragged B and T (implicit tile padding on both axes).
        (*_make_case(k1, 2, 16, [11, 16], [2, 5], [7, 12]), True, True),
        # Single T tile, ragged T (1500 -> block 1536).
        (*_make_case(k2, 5, 1500, [1500, 903, 1, 700, 1200],
                     [10, 100, 0, 50, 600], [200, 400, 1, 300, 1100]),
         True, True),
        # Multi T-tile accumulation (T=2600 -> two 2048-wide tiles), segment
        # crossing the tile boundary.
        (*_make_case(k3, 3, 2600, [2600, 1800, 2049],
                     [100, 50, 2000], [2100, 1500, 2049]), True, True),
        # Multi batch-tile with ragged B (B=10, TB=8 -> 2 tiles, rows 8..15
        # of the last tile are implicit pad and dropped at writeback).
        (*_make_case(k4, 10, 300,
                     [300, 250, 1, 128, 129, 60, 300, 7, 200, 100],
                     [10, 20, 0, 5, 0, 10, 100, 0, 50, 30],
                     [200, 240, 1, 100, 120, 50, 290, 7, 190, 90]),
         True, True),
        # Attention branch disabled.
        (*_make_case(k5, 3, 200, [200, 64, 130], [5, 10, 20], [60, 40, 100]),
         False, True),
        # Mid branch disabled.
        (*_make_case(k6, 2, 16, [11, 16], [2, 5], [7, 12]), True, False),
    ]

    for output, target, use_attw, use_mid in cases:
        loss, ind = sdn_loss(output, target,
                             use_attention_loss=use_attw, use_mid_loss=use_mid)
        jax.block_until_ready(loss['total_loss'])

        ref_loss, ref_ind = _reference(output, target,
                                       use_attention_loss=use_attw,
                                       use_mid_loss=use_mid)

        for name in ref_loss:
            assert jnp.allclose(loss[name], ref_loss[name],
                                rtol=1e-4, atol=1e-5), (name, loss[name], ref_loss[name])
        assert jnp.allclose(ind, ref_ind, rtol=1e-4, atol=1e-5)

    print("KERNEL_OK")
</pallas_src>

<mosaic_0001>
module attributes {stable_mosaic.version = 11 : i64} {
  func.func @kernel(%arg0: i32, %arg1: i32, %arg2: memref<8x1xi32, #tpu.memory_space<vmem>>, %arg3: memref<8x128xf32, #tpu.memory_space<vmem>>, %arg4: memref<8x128xf32, #tpu.memory_space<vmem>>, %arg5: memref<8x128xf32, #tpu.memory_space<vmem>>, %arg6: memref<8x128xf32, #tpu.memory_space<vmem>>, %arg7: memref<8x128xf32, #tpu.memory_space<vmem>>, %arg8: memref<8x128xf32, #tpu.memory_space<vmem>>, %arg9: memref<8x128xf32, #tpu.memory_space<vmem>>, %arg10: memref<8x8xf32, #tpu.memory_space<vmem>>, %arg11: memref<8x1xf32, #tpu.memory_space<vmem>>, %arg12: memref<8x1xf32, #tpu.memory_space<vmem>>, %arg13: memref<8x1xf32, #tpu.memory_space<vmem>>, %arg14: memref<8x1xf32, #tpu.memory_space<vmem>>, %arg15: memref<8x1xf32, #tpu.memory_space<vmem>>) attributes {dimension_semantics = [#tpu.dimension_semantics<parallel>, #tpu.dimension_semantics<arbitrary>], iteration_bounds = array<i64: 1, 1>, scalar_prefetch = 0 : i64, scratch_operands = 5 : i64, tpu.core_type = #tpu.core_type<tc>, window_params = [{transform_indices = @transform_0, window_bounds = array<i64: 8, 1>}, {transform_indices = @transform_1, window_bounds = array<i64: 8, 128>}, {transform_indices = @transform_2, window_bounds = array<i64: 8, 128>}, {transform_indices = @transform_3, window_bounds = array<i64: 8, 128>}, {transform_indices = @transform_4, window_bounds = array<i64: 8, 128>}, {transform_indices = @transform_5, window_bounds = array<i64: 8, 128>}, {transform_indices = @transform_6, window_bounds = array<i64: 8, 128>}, {transform_indices = @transform_7, window_bounds = array<i64: 8, 128>}, {transform_indices = @transform_8, window_bounds = array<i64: 8, 8>}]} {
    %c0_i32 = arith.constant 0 : i32
    %0 = arith.cmpi eq, %arg1, %c0_i32 : i32
    %1 = arith.extui %0 : i1 to i32
    %c0_i32_0 = arith.constant 0 : i32
    %2 = arith.cmpi ne, %1, %c0_i32_0 : i32
    scf.if %2 {
      %cst_54 = arith.constant 0.000000e+00 : f32
      %81 = vector.broadcast %cst_54 : f32 to vector<8x1xf32>
      %c0_55 = arith.constant 0 : index
      %c0_56 = arith.constant 0 : index
      %82 = vector.load %arg11[%c0_55, %c0_56] : memref<8x1xf32, #tpu.memory_space<vmem>>, vector<8x1xf32>
      tpu.vector_store %arg11[%c0_55, %c0_56], %81 {strides = array<i32>} : memref<8x1xf32, #tpu.memory_space<vmem>>, vector<8x1xf32>,
      %cst_57 = arith.constant 0.000000e+00 : f32
      %83 = vector.broadcast %cst_57 : f32 to vector<8x1xf32>
      %c0_58 = arith.constant 0 : index
      %c0_59 = arith.constant 0 : index
      %84 = vector.load %arg12[%c0_58, %c0_59] : memref<8x1xf32, #tpu.memory_space<vmem>>, vector<8x1xf32>
      tpu.vector_store %arg12[%c0_58, %c0_59], %83 {strides = array<i32>} : memref<8x1xf32, #tpu.memory_space<vmem>>, vector<8x1xf32>,
      %cst_60 = arith.constant 0.000000e+00 : f32
      %85 = vector.broadcast %cst_60 : f32 to vector<8x1xf32>
      %c0_61 = arith.constant 0 : index
      %c0_62 = arith.constant 0 : index
      %86 = vector.load %arg13[%c0_61, %c0_62] : memref<8x1xf32, #tpu.memory_space<vmem>>, vector<8x1xf32>
      tpu.vector_store %arg13[%c0_61, %c0_62], %85 {strides = array<i32>} : memref<8x1xf32, #tpu.memory_space<vmem>>, vector<8x1xf32>,
      %cst_63 = arith.constant 0.000000e+00 : f32
      %87 = vector.broadcast %cst_63 : f32 to vector<8x1xf32>
      %c0_64 = arith.constant 0 : index
      %c0_65 = arith.constant 0 : index
      %88 = vector.load %arg14[%c0_64, %c0_65] : memref<8x1xf32, #tpu.memory_space<vmem>>, vector<8x1xf32>
      tpu.vector_store %arg14[%c0_64, %c0_65], %87 {strides = array<i32>} : memref<8x1xf32, #tpu.memory_space<vmem>>, vector<8x1xf32>,
      %cst_66 = arith.constant 0.000000e+00 : f32
      %89 = vector.broadcast %cst_66 : f32 to vector<8x1xf32>
      %c0_67 = arith.constant 0 : index
      %c0_68 = arith.constant 0 : index
      %90 = vector.load %arg15[%c0_67, %c0_68] : memref<8x1xf32, #tpu.memory_space<vmem>>, vector<8x1xf32>
      tpu.vector_store %arg15[%c0_67, %c0_68], %89 {strides = array<i32>} : memref<8x1xf32, #tpu.memory_space<vmem>>, vector<8x1xf32>,
    } else {
    }
    %c0 = arith.constant 0 : index
    %c0_1 = arith.constant 0 : index
    %3 = vector.load %arg2[%c0, %c0_1] : memref<8x1xi32, #tpu.memory_space<vmem>>, vector<8x1xi32>
    %c128_i32 = arith.constant 128 : i32
    %4 = arith.muli %arg1, %c128_i32 : i32
    %5 = vector.broadcast %4 : i32 to vector<8x1xi32>
    %6 = arith.subi %3, %5 : vector<8x1xi32>
    %7 = tpu.iota {dimensions = array<i32: 1>} : vector<8x128xi32>
    %8 = vector.broadcast %6 : vector<8x1xi32> to vector<8x128xi32>
    %9 = arith.cmpi slt, %7, %8 : vector<8x128xi32>
    %c0_2 = arith.constant 0 : index
    %c0_3 = arith.constant 0 : index
    %10 = vector.load %arg3[%c0_2, %c0_3] : memref<8x128xf32, #tpu.memory_space<vmem>>, vector<8x128xf32>
    %c0_4 = arith.constant 0 : index
    %c0_5 = arith.constant 0 : index
    %11 = vector.load %arg4[%c0_4, %c0_5] : memref<8x128xf32, #tpu.memory_space<vmem>>, vector<8x128xf32>
    %c0_6 = arith.constant 0 : index
    %c0_7 = arith.constant 0 : index
    %12 = vector.load %arg5[%c0_6, %c0_7] : memref<8x128xf32, #tpu.memory_space<vmem>>, vector<8x128xf32>
    %c0_8 = arith.constant 0 : index
    %c0_9 = arith.constant 0 : index
    %13 = vector.load %arg6[%c0_8, %c0_9] : memref<8x128xf32, #tpu.memory_space<vmem>>, vector<8x128xf32>
    %cst = arith.constant 0.000000e+00 : f32
    %14 = vector.broadcast %cst : f32 to vector<8x128xf32>
    %15 = arith.cmpf ogt, %12, %14 : vector<8x128xf32>
    %16 = arith.andi %9, %15 : vector<8x128xi1>
    %17 = arith.divf %10, %12 : vector<8x128xf32>
    %18 = math.log %17 : vector<8x128xf32>
    %19 = arith.mulf %12, %18 : vector<8x128xf32>
    %cst_10 = arith.constant 0.000000e+00 : f32
    %20 = vector.broadcast %cst_10 : f32 to vector<8x128xf32>
    %21 = arith.select %16, %19, %20 : vector<8x128xi1>, vector<8x128xf32>
    %cst_11 = arith.constant 0.000000e+00 : f32
    %22 = vector.broadcast %cst_11 : f32 to vector<8x128xf32>
    %23 = arith.cmpf ogt, %13, %22 : vector<8x128xf32>
    %24 = arith.andi %9, %23 : vector<8x128xi1>
    %25 = arith.divf %11, %13 : vector<8x128xf32>
    %26 = math.log %25 : vector<8x128xf32>
    %27 = arith.mulf %13, %26 : vector<8x128xf32>
    %cst_12 = arith.constant 0.000000e+00 : f32
    %28 = vector.broadcast %cst_12 : f32 to vector<8x128xf32>
    %29 = arith.select %24, %27, %28 : vector<8x128xi1>, vector<8x128xf32>
    %c0_13 = arith.constant 0 : index
    %c0_14 = arith.constant 0 : index
    %30 = vector.load %arg11[%c0_13, %c0_14] : memref<8x1xf32, #tpu.memory_space<vmem>>, vector<8x1xf32>
    %cst_15 = arith.constant dense<0.000000e+00> : vector<8xf32>
    %31 = vector.multi_reduction <add>, %21, %cst_15 [1] : vector<8x128xf32> to vector<8xf32>
    %32 = vector.shape_cast %31 : vector<8xf32> to vector<8x1xf32>
    %cst_16 = arith.constant 0.000000e+00 : f32
    %33 = vector.broadcast %cst_16 : f32 to vector<8x1xf32>
    %34 = arith.subf %33, %32 : vector<8x1xf32>
    %35 = arith.addf %30, %34 : vector<8x1xf32>
    %c0_17 = arith.constant 0 : index
    %c0_18 = arith.constant 0 : index
    %36 = vector.load %arg11[%c0_17, %c0_18] : memref<8x1xf32, #tpu.memory_space<vmem>>, vector<8x1xf32>
    tpu.vector_store %arg11[%c0_17, %c0_18], %35 {strides = array<i32>} : memref<8x1xf32, #tpu.memory_space<vmem>>, vector<8x1xf32>,
    %c0_19 = arith.constant 0 : index
    %c0_20 = arith.constant 0 : index
    %37 = vector.load %arg12[%c0_19, %c0_20] : memref<8x1xf32, #tpu.memory_space<vmem>>, vector<8x1xf32>
    %cst_21 = arith.constant dense<0.000000e+00> : vector<8xf32>
    %38 = vector.multi_reduction <add>, %29, %cst_21 [1] : vector<8x128xf32> to vector<8xf32>
    %39 = vector.shape_cast %38 : vector<8xf32> to vector<8x1xf32>
    %cst_22 = arith.constant 0.000000e+00 : f32
    %40 = vector.broadcast %cst_22 : f32 to vector<8x1xf32>
    %41 = arith.subf %40, %39 : vector<8x1xf32>
    %42 = arith.addf %37, %41 : vector<8x1xf32>
    %c0_23 = arith.constant 0 : index
    %c0_24 = arith.constant 0 : index
    %43 = vector.load %arg12[%c0_23, %c0_24] : memref<8x1xf32, #tpu.memory_space<vmem>>, vector<8x1xf32>
    tpu.vector_store %arg12[%c0_23, %c0_24], %42 {strides = array<i32>} : memref<8x1xf32, #tpu.memory_space<vmem>>, vector<8x1xf32>,
    %c0_25 = arith.constant 0 : index
    %c0_26 = arith.constant 0 : index
    %44 = vector.load %arg7[%c0_25, %c0_26] : memref<8x128xf32, #tpu.memory_space<vmem>>, vector<8x128xf32>
    %c0_27 = arith.constant 0 : index
    %c0_28 = arith.constant 0 : index
    %45 = vector.load %arg13[%c0_27, %c0_28] : memref<8x1xf32, #tpu.memory_space<vmem>>, vector<8x1xf32>
    %cst_29 = arith.constant 0.000000e+00 : f32
    %46 = vector.broadcast %cst_29 : f32 to vector<8x128xf32>
    %47 = arith.select %9, %44, %46 : vector<8x128xi1>, vector<8x128xf32>
    %cst_30 = arith.constant dense<0.000000e+00> : vector<8xf32>
    %48 = vector.multi_reduction <add>, %47, %cst_30 [1] : vector<8x128xf32> to vector<8xf32>
    %49 = vector.shape_cast %48 : vector<8xf32> to vector<8x1xf32>
    %50 = arith.addf %45, %49 : vector<8x1xf32>
    %c0_31 = arith.constant 0 : index
    %c0_32 = arith.constant 0 : index
    %51 = vector.load %arg13[%c0_31, %c0_32] : memref<8x1xf32, #tpu.memory_space<vmem>>, vector<8x1xf32>
    tpu.vector_store %arg13[%c0_31, %c0_32], %50 {strides = array<i32>} : memref<8x1xf32, #tpu.memory_space<vmem>>, vector<8x1xf32>,
    %c0_33 = arith.constant 0 : index
    %c0_34 = arith.constant 0 : index
    %52 = vector.load %arg8[%c0_33, %c0_34] : memref<8x128xf32, #tpu.memory_space<vmem>>, vector<8x128xf32>
    %cst_35 = arith.constant 0.000000e+00 : f32
    %53 = vector.broadcast %cst_35 : f32 to vector<8x128xf32>
    %54 = arith.subf %53, %44 : vector<8x128xf32>
    %55 = math.log %52 : vector<8x128xf32>
    %56 = arith.mulf %54, %55 : vector<8x128xf32>
    %cst_36 = arith.constant 0.000000e+00 : f32
    %57 = vector.broadcast %cst_36 : f32 to vector<8x128xf32>
    %58 = arith.select %9, %56, %57 : vector<8x128xi1>, vector<8x128xf32>
    %c0_37 = arith.constant 0 : index
    %c0_38 = arith.constant 0 : index
    %59 = vector.load %arg14[%c0_37, %c0_38] : memref<8x1xf32, #tpu.memory_space<vmem>>, vector<8x1xf32>
    %cst_39 = arith.constant dense<0.000000e+00> : vector<8xf32>
    %60 = vector.multi_reduction <add>, %58, %cst_39 [1] : vector<8x128xf32> to vector<8xf32>
    %61 = vector.shape_cast %60 : vector<8xf32> to vector<8x1xf32>
    %62 = arith.addf %59, %61 : vector<8x1xf32>
    %c0_40 = arith.constant 0 : index
    %c0_41 = arith.constant 0 : index
    %63 = vector.load %arg14[%c0_40, %c0_41] : memref<8x1xf32, #tpu.memory_space<vmem>>, vector<8x1xf32>
    tpu.vector_store %arg14[%c0_40, %c0_41], %62 {strides = array<i32>} : memref<8x1xf32, #tpu.memory_space<vmem>>, vector<8x1xf32>,
    %c0_42 = arith.constant 0 : index
    %c0_43 = arith.constant 0 : index
    %64 = vector.load %arg9[%c0_42, %c0_43] : memref<8x128xf32, #tpu.memory_space<vmem>>, vector<8x128xf32>
    %cst_44 = arith.constant 0.000000e+00 : f32
    %65 = vector.broadcast %cst_44 : f32 to vector<8x128xf32>
    %66 = arith.subf %65, %44 : vector<8x128xf32>
    %cst_45 = arith.constant 9.99999993E-9 : f32
    %67 = vector.broadcast %cst_45 : f32 to vector<8x128xf32>
    %68 = arith.addf %64, %67 : vector<8x128xf32>
    %69 = math.log %68 : vector<8x128xf32>
    %70 = arith.mulf %66, %69 : vector<8x128xf32>
    %cst_46 = arith.constant 0.000000e+00 : f32
    %71 = vector.broadcast %cst_46 : f32 to vector<8x128xf32>
    %72 = arith.select %9, %70, %71 : vector<8x128xi1>, vector<8x128xf32>
    %c0_47 = arith.constant 0 : index
    %c0_48 = arith.constant 0 : index
    %73 = vector.load %arg15[%c0_47, %c0_48] : memref<8x1xf32, #tpu.memory_space<vmem>>, vector<8x1xf32>
    %cst_49 = arith.constant dense<0.000000e+00> : vector<8xf32>
    %74 = vector.multi_reduction <add>, %72, %cst_49 [1] : vector<8x128xf32> to vector<8xf32>
    %75 = vector.shape_cast %74 : vector<8xf32> to vector<8x1xf32>
    %76 = arith.addf %73, %75 : vector<8x1xf32>
    %c0_50 = arith.constant 0 : index
    %c0_51 = arith.constant 0 : index
    %77 = vector.load %arg15[%c0_50, %c0_51] : memref<8x1xf32, #tpu.memory_space<vmem>>, vector<8x1xf32>
    tpu.vector_store %arg15[%c0_50, %c0_51], %76 {strides = array<i32>} : memref<8x1xf32, #tpu.memory_space<vmem>>, vector<8x1xf32>,
    %c0_i32_52 = arith.constant 0 : i32
    %78 = arith.cmpi eq, %arg1, %c0_i32_52 : i32
    %79 = arith.extui %78 : i1 to i32
    %c0_i32_53 = arith.constant 0 : i32
    %80 = arith.cmpi ne, %79, %c0_i32_53 : i32
    scf.if %80 {
      %81 = tpu.iota {dimensions = array<i32: 1>} : vector<8x8xi32>
      %c0_i32_54 = arith.constant 0 : i32
      %82 = vector.broadcast %c0_i32_54 : i32 to vector<8x8xi32>
      %83 = arith.cmpi eq, %81, %82 : vector<8x8xi32>
      %c0_55 = arith.constant 0 : index
      %c0_56 = arith.constant 0 : index
      %84 = vector.load %arg11[%c0_55, %c0_56] : memref<8x1xf32, #tpu.memory_space<vmem>>, vector<8x1xf32>
      %cst_57 = arith.constant 0.000000e+00 : f32
      %85 = vector.shape_cast %84 : vector<8x1xf32> to vector<8x1xf32>
      %86 = vector.broadcast %85 : vector<8x1xf32> to vector<8x8xf32>
      %87 = vector.broadcast %cst_57 : f32 to vector<8x8xf32>
      %88 = arith.select %83, %86, %87 : vector<8x8xi1>, vector<8x8xf32>
      %c1_i32 = arith.constant 1 : i32
      %89 = vector.broadcast %c1_i32 : i32 to vector<8x8xi32>
      %90 = arith.cmpi eq, %81, %89 : vector<8x8xi32>
      %c0_58 = arith.constant 0 : index
      %c0_59 = arith.constant 0 : index
      %91 = vector.load %arg12[%c0_58, %c0_59] : memref<8x1xf32, #tpu.memory_space<vmem>>, vector<8x1xf32>
      %cst_60 = arith.constant 0.000000e+00 : f32
      %92 = vector.shape_cast %91 : vector<8x1xf32> to vector<8x1xf32>
      %93 = vector.broadcast %92 : vector<8x1xf32> to vector<8x8xf32>
      %94 = vector.broadcast %cst_60 : f32 to vector<8x8xf32>
      %95 = arith.select %90, %93, %94 : vector<8x8xi1>, vector<8x8xf32>
      %96 = arith.addf %88, %95 : vector<8x8xf32>
      %c2_i32 = arith.constant 2 : i32
      %97 = vector.broadcast %c2_i32 : i32 to vector<8x8xi32>
      %98 = arith.cmpi eq, %81, %97 : vector<8x8xi32>
      %c0_61 = arith.constant 0 : index
      %c0_62 = arith.constant 0 : index
      %99 = vector.load %arg14[%c0_61, %c0_62] : memref<8x1xf32, #tpu.memory_space<vmem>>, vector<8x1xf32>
      %cst_63 = arith.constant 0.000000e+00 : f32
      %100 = vector.shape_cast %99 : vector<8x1xf32> to vector<8x1xf32>
      %101 = vector.broadcast %100 : vector<8x1xf32> to vector<8x8xf32>
      %102 = vector.broadcast %cst_63 : f32 to vector<8x8xf32>
      %103 = arith.select %98, %101, %102 : vector<8x8xi1>, vector<8x8xf32>
      %104 = arith.addf %96, %103 : vector<8x8xf32>
      %c3_i32 = arith.constant 3 : i32
      %105 = vector.broadcast %c3_i32 : i32 to vector<8x8xi32>
      %106 = arith.cmpi eq, %81, %105 : vector<8x8xi32>
      %c0_64 = arith.constant 0 : index
      %c0_65 = arith.constant 0 : index
      %107 = vector.load %arg13[%c0_64, %c0_65] : memref<8x1xf32, #tpu.memory_space<vmem>>, vector<8x1xf32>
      %cst_66 = arith.constant 0.000000e+00 : f32
      %108 = vector.shape_cast %107 : vector<8x1xf32> to vector<8x1xf32>
      %109 = vector.broadcast %108 : vector<8x1xf32> to vector<8x8xf32>
      %110 = vector.broadcast %cst_66 : f32 to vector<8x8xf32>
      %111 = arith.select %106, %109, %110 : vector<8x8xi1>, vector<8x8xf32>
      %112 = arith.addf %104, %111 : vector<8x8xf32>
      %c4_i32 = arith.constant 4 : i32
      %113 = vector.broadcast %c4_i32 : i32 to vector<8x8xi32>
      %114 = arith.cmpi eq, %81, %113 : vector<8x8xi32>
      %c0_67 = arith.constant 0 : index
      %c0_68 = arith.constant 0 : index
      %115 = vector.load %arg15[%c0_67, %c0_68] : memref<8x1xf32, #tpu.memory_space<vmem>>, vector<8x1xf32>
      %cst_69 = arith.constant 0.000000e+00 : f32
      %116 = vector.shape_cast %115 : vector<8x1xf32> to vector<8x1xf32>
      %117 = vector.broadcast %116 : vector<8x1xf32> to vector<8x8xf32>
      %118 = vector.broadcast %cst_69 : f32 to vector<8x8xf32>
      %119 = arith.select %114, %117, %118 : vector<8x8xi1>, vector<8x8xf32>
      %120 = arith.addf %112, %119 : vector<8x8xf32>
      %c0_70 = arith.constant 0 : index
      %c0_71 = arith.constant 0 : index
      %121 = vector.load %arg10[%c0_70, %c0_71] : memref<8x8xf32, #tpu.memory_space<vmem>>, vector<8x8xf32>
      tpu.vector_store %arg10[%c0_70, %c0_71], %120 {strides = array<i32>} : memref<8x8xf32, #tpu.memory_space<vmem>>, vector<8x8xf32>,
    } else {
    }
    return
  }
  func.func @transform_0(%arg0: i32, %arg1: i32) -> (i32, i32) {
    %c0_i32 = arith.constant 0 : i32
    %c0_i32_0 = arith.constant 0 : i32
    return %arg0, %c0_i32 : i32, i32
  }
  func.func @transform_1(%arg0: i32, %arg1: i32) -> (i32, i32) {
    %c0_i32 = arith.constant 0 : i32
    return %arg0, %arg1 : i32, i32
  }
  func.func @transform_2(%arg0: i32, %arg1: i32) -> (i32, i32) {
    %c0_i32 = arith.constant 0 : i32
    return %arg0, %arg1 : i32, i32
  }
  func.func @transform_3(%arg0: i32, %arg1: i32) -> (i32, i32) {
    %c0_i32 = arith.constant 0 : i32
    return %arg0, %arg1 : i32, i32
  }
  func.func @transform_4(%arg0: i32, %arg1: i32) -> (i32, i32) {
    %c0_i32 = arith.constant 0 : i32
    return %arg0, %arg1 : i32, i32
  }
  func.func @transform_5(%arg0: i32, %arg1: i32) -> (i32, i32) {
    %c0_i32 = arith.constant 0 : i32
    return %arg0, %arg1 : i32, i32
  }
  func.func @transform_6(%arg0: i32, %arg1: i32) -> (i32, i32) {
    %c0_i32 = arith.constant 0 : i32
    return %arg0, %arg1 : i32, i32
  }
  func.func @transform_7(%arg0: i32, %arg1: i32) -> (i32, i32) {
    %c0_i32 = arith.constant 0 : i32
    return %arg0, %arg1 : i32, i32
  }
  func.func @transform_8(%arg0: i32, %arg1: i32) -> (i32, i32) {
    %c0_i32 = arith.constant 0 : i32
    %c0_i32_0 = arith.constant 0 : i32
    return %arg0, %c0_i32 : i32, i32
  }
}

</mosaic_0001>

<bundles_post_ra>
// kernel: tpu_custom_call.1
= control target key start
LH: loop header
LB: loop body
LE: loop exit
PB: predicated region body
PF: predicated region fallthrough
CT: control target
= control target key end

     0   :  { %v218_v1 = vmov 0   ;;  %s327_s0 = inlined_call_operand.vmem [shape: s32[2,1], index: 0, kind: input, shape index: {}]   ;;  %s328_s1 = inlined_call_operand.vmem [shape: f32[2,16], index: 1, kind: input, shape index: {}]   ;;  %s329_s2 = inlined_call_operand.vmem [shape: f32[2,16], index: 2, kind: input, shape index: {}]   ;;  %s330_s3 = inlined_call_operand.vmem [shape: f32[2,16], index: 3, kind: input, shape index: {}]   ;;  %s331_s4 = inlined_call_operand.vmem [shape: f32[2,16], index: 4, kind: input, shape index: {}]   ;;  %s332_s5 = inlined_call_operand.vmem [shape: f32[2,16], index: 5, kind: input, shape index: {}]   ;;  %s333_s6 = inlined_call_operand.vmem [shape: f32[2,16], index: 6, kind: input, shape index: {}]   ;;  %s334_s7 = inlined_call_operand.vmem [shape: f32[2,16], index: 7, kind: input, shape index: {}]   ;;  %s335_s8 = inlined_call_operand.hbm [shape: f32[2,8], index: 8, kind: output, shape index: {}]  }
   0x1   :  { %v40_v0 = vld [vmem:[%s327_s0] sm:$0xff]  ;;  %182 = vset.pattern.permute.xlu0 %v218_v1  ;;  %183 = vset.pattern.permute.xlu1 %v218_v1 }
   0x2   :  { %47 = vperm.xlu0 %182, %v40_v0  }
   0x3   :  { %13 = vsyncpa [#allocation8], 0  ;;  %v52_v2 = vld [vmem:[%s330_s3] sm:$0xff]  ;;  %v44_v16 = vlaneseq  ;;  %vm34_vm5 = vcmask 7168   ;;  %v219_v33 = vmov 0.0   ;;  %vm159_vm11 = vcmask 64512  }
   0x4   :  { %184 = vrcp.f32 %v52_v2  ;;  %v53_v3 = vld [vmem:[%s331_s4] sm:$0xff]  ;;  %vm54_vm0 = vcmp.gt.f32.partialorder %v52_v2, 0.0  ;;  %38 = vst.msk [vmem:[#allocation5] sm:$0xff] %vm34_vm5, %v219_v33  ;;  %35 = vst.msk [vmem:[#allocation2] sm:$0xff] %vm34_vm5, %v219_v33 }
   0x5   :  { %186 = vrcp.f32 %v53_v3  ;;  %v50_v5 = vld [vmem:[%s328_s1] sm:$0xff]  ;;  %v292_v21 = vand.u32 127, %v44_v16  ;;  %vm62_vm1 = vcmp.gt.f32.partialorder %v53_v3, 0.0  ;;  %36 = vst.msk [vmem:[#allocation3] sm:$0xff] %vm34_vm5, %v219_v33  ;;  %37 = vst.msk [vmem:[#allocation4] sm:$0xff] %vm34_vm5, %v219_v33 }
   0x6   :  { %v90_v7 = vld [vmem:[%s333_s6] sm:$0xff]  ;;  %39 = vst.msk [vmem:[#allocation6] sm:$0xff] %vm34_vm5, %v219_v33 }
   0x7   :  { %v51_v9 = vld [vmem:[%s329_s2] sm:$0xff]  ;;  %188 = vlog2.f32 %v90_v7  ;;  %vm115_vm6 = vcmp.eq.s32.totalorder %v292_v21, 0  ;;  %vm123_vm7 = vcmp.eq.s32.totalorder %v292_v21, 1  ;;  %vm132_vm8 = vcmp.eq.s32.totalorder %v292_v21, 2 }
   0x8   :  { %v101_v11 = vld [vmem:[%s334_s7] sm:$0xff]  ;;  %vm141_vm9 = vcmp.eq.s32.totalorder %v292_v21, 3  ;;  %vm150_vm10 = vcmp.eq.s32.totalorder %v292_v21, 4 }
   0x9   :  { %v102_v12 = vadd.f32 1e-08, %v101_v11  ;;  %v83_v14 = vld [vmem:[%s332_s5] sm:$0xff] }
   0xa   :  { %v91_v17 = vsub.f32 0.0, %v83_v14 }
   0xb   :  { %v96_v37 = vld [vmem:[#allocation5] sm:$0xff]  ;;  %v70_v41 = vld [vmem:[#allocation2] sm:$0xff] }
   0xc   :  { %v77_v45 = vld [vmem:[#allocation3] sm:$0xff]  ;;  %v84_v47 = vld [vmem:[#allocation4] sm:$0xff] }
   0xd   :  { %v107_v52 = vld [vmem:[#allocation6] sm:$0xff] }
  0x11   :  { %v185_v4 = vpop.eup %184 }
  0x12   :  { %v187_v6 = vpop.eup %186  ;;  %v57_v8 = vmul.f32 %v185_v4, %v50_v5 }
  0x13   :  { %v65_v10 = vmul.f32 %v187_v6, %v51_v9 }
  0x14   :  { %190 = vlog2.f32 %v57_v8  ;;  %v189_v13 = vpop.eup %188 }
  0x15   :  { %192 = vlog2.f32 %v65_v10  ;;  %v93_v18 = vmul.f32 0.6931472, %v189_v13 }
  0x16   :  { %194 = vlog2.f32 %v102_v12 }
  0x17   :  { %v94_v22 = vmul.f32 %v93_v18, %v91_v17 }
  0x21   :  { %v191_v15 = vpop.eup %190 }
  0x22   :  { %v193_v19 = vpop.eup %192  ;;  %v59_v20 = vmul.f32 0.6931472, %v191_v15 }
  0x23   :  { %v67_v23 = vmul.f32 0.6931472, %v193_v19  ;;  %v195_v29 = vpop.eup %194 }
  0x24   :  { %v60_v24 = vmul.f32 %v59_v20, %v52_v2  ;;  %v104_v32 = vmul.f32 0.6931472, %v195_v29 }
  0x25   :  { %v68_v28 = vmul.f32 %v67_v23, %v53_v3 }
  0x26   :  { %v105_v35 = vmul.f32 %v104_v32, %v91_v17 }
  0x7d   :  { %v48_v25 = vpop.permute.xlu0 %47 }
  0x7e   :  { %vm295_vm2 = vcmp.lt.s32.totalorder %v292_v21, %v48_v25 }
  0x7f   :  { %v95_v27 = vsel %vm295_vm2, %v94_v22, 0.0  ;;  %vm55_vm3 = vmand %vm295_vm2, %vm54_vm0  ;;  %v85_v34 = vsel %vm295_vm2, %v83_v14, 0.0  ;;  %v106_v36 = vsel %vm295_vm2, %v105_v35, 0.0 }
  0x80   :  { %97 = vadd.xlane.f32.xlu1 %v95_v27  ;;  %v61_v30 = vsel %vm55_vm3, %v60_v24, 0.0  ;;  %vm63_vm4 = vmand %vm295_vm2, %vm62_vm1 }
  0x81   :  { %71 = vadd.xlane.f32.xlu0 %v61_v30  ;;  %v69_v31 = vsel %vm63_vm4, %v68_v28, 0.0 }
  0x84   :  { %78 = vadd.xlane.f32.xlu1 %v69_v31 }
  0x88   :  { %86 = vadd.xlane.f32.xlu1 %v85_v34 }
  0x8c   :  { %108 = vadd.xlane.f32.xlu1 %v106_v36 }
 0x109   :  { %v98_v38 = vpop.xlane.xlu1 %97 }
 0x10a   :  { %v99_v39 = vadd.f32 %v98_v38, %v96_v37  ;;  %v72_v40 = vpop.xlane.xlu0 %71 }
 0x10b   :  { %v73_v42 = vsub.f32 0.0, %v72_v40 }
 0x10c   :  { %100 = vst.msk [vmem:[#allocation5] sm:$0xff] %vm34_vm5, %v99_v39 }
 0x10d   :  { %v74_v43 = vadd.f32 %v73_v42, %v70_v41  ;;  %v79_v44 = vpop.xlane.xlu1 %78 }
 0x10e   :  { %v80_v46 = vsub.f32 0.0, %v79_v44 }
 0x10f   :  { %76 = vst.msk [vmem:[#allocation2] sm:$0xff] %vm34_vm5, %v74_v43 }
 0x110   :  { %v81_v48 = vadd.f32 %v80_v46, %v77_v45 }
 0x111   :  { %v87_v49 = vpop.xlane.xlu1 %86 }
 0x112   :  { %82 = vst.msk [vmem:[#allocation3] sm:$0xff] %vm34_vm5, %v81_v48  ;;  %v88_v50 = vadd.f32 %v87_v49, %v84_v47 }
 0x113   :  { %v133_v51 = vld [vmem:[#allocation5] sm:$0xff] }
 0x114   :  { %89 = vst.msk [vmem:[#allocation4] sm:$0xff] %vm34_vm5, %v88_v50  ;;  %136 = vperm.xlu0 %182, %v133_v51  }
 0x115   :  { %v109_v53 = vpop.xlane.xlu1 %108 }
 0x116   :  { %v110_v54 = vadd.f32 %v109_v53, %v107_v52  ;;  %v116_v55 = vld [vmem:[#allocation2] sm:$0xff] }
 0x117   :  { %119 = vperm.xlu1 %183, %v116_v55  }
 0x118   :  { %111 = vst.msk [vmem:[#allocation6] sm:$0xff] %vm34_vm5, %v110_v54 }
 0x119   :  { %v124_v56 = vld [vmem:[#allocation3] sm:$0xff] }
 0x11b   :  { %127 = vperm.xlu1 %183, %v124_v56   ;;  %v142_v57 = vld [vmem:[#allocation4] sm:$0xff] }
 0x11f   :  { %145 = vperm.xlu1 %183, %v142_v57   ;;  %v151_v58 = vld [vmem:[#allocation6] sm:$0xff] }
 0x123   :  { %154 = vperm.xlu1 %183, %v151_v58  }
 0x18f   :  { %v137_v60 = vpop.permute.xlu0 %136 }
 0x190   :  { %v139_v1 = vsel %vm132_vm8, %v137_v60, 0.0 }
 0x192   :  { %v120_v59 = vpop.permute.xlu1 %119 }
 0x193   :  { %v122_v62 = vsel %vm115_vm6, %v120_v59, 0.0 }
 0x196   :  { %v128_v61 = vpop.permute.xlu1 %127 }
 0x197   :  { %v130_v63 = vsel %vm123_vm7, %v128_v61, 0.0 }
 0x198   :  { %v131_v0 = vadd.f32 %v130_v63, %v122_v62 }
 0x19a   :  { %v140_v2 = vadd.f32 %v139_v1, %v131_v0  ;;  %v146_v3 = vpop.permute.xlu1 %145 }
 0x19b   :  { %v148_v4 = vsel %vm141_vm9, %v146_v3, 0.0 }
 0x19c   :  { %v149_v5 = vadd.f32 %v148_v4, %v140_v2 }
 0x19e   :  { %v155_v6 = vpop.permute.xlu1 %154 }
 0x19f   :  { %v157_v7 = vsel %vm150_vm10, %v155_v6, 0.0 }
 0x1a0   :  { %v158_v8 = vadd.f32 %v157_v7, %v149_v5 }
 0x1a2   :  { %160 = vst.msk [vmem:[#allocation7] sm:$0xff] %vm159_vm11, %v158_v8 }
 0x1a3   :  { %165 = vsyncadd [#allocation8], 96  ;;  %s220_s2 = smov [#allocation7]  }
 0x1a4   :  { %s166_s5 = sshll.u32 %s220_s2, 4  ;;  %s167_s5 = int_to_ptr.vmem [resolvable:$true] %s166_s5 }
 0x1a5   :  { %s196_s6 = scalar_lea.vmem %s167_s5, 32  ;;  %s200_s7 = scalar_lea.vmem %s167_s5, 128 }
 0x1a6   :  { %p197_p0 = scmp.ne.s32.totalorder %s167_s5, %s196_s6  ;;  %p201_p1 = scmp.lt.s32.totalorder %s167_s5, %s167_s5 }
 0x1a7   :  { %p202_p2 = scmp.lt.s32.totalorder %s200_s7, %s196_s6 }
 0x1a9   :  { %p203_p3 = por %p202_p2, %p201_p1 }
 0x1ab   :  { %p204_p4 = pnand %p203_p3, %p197_p0 }
 0x1ad   :  { %207 = shalt.err (!%p204_p4)
}
 0x1ae   :  { %s221_s17 = smov 32   ;;  %s222_s18 = smov 2  }
 0x1af   :  { %172 = dma.vmem_to_hbm [thread:$0]  %s167_s5, 32, %s335_s8, [#allocation8], %s221_s17, %s221_s17, %s222_s18  }
 0x1b0   :  { %216 = dma.done.wait [#allocation8], 128  }
 0x1b1   :  { %217 = vsyncadd [#allocation8], 4294967168 }
 0x1b2   :  { %176 = vsyncpa [#allocation8], 1 }

</bundles_post_ra>
